<compile_context>
chip_gen: v5e
topology: v5e:2x2
jax: 0.10.0
libtpu: 0.0.40
codegen_flags: <defaults>
</compile_context>

<pallas_src>
import jax
import jax.numpy as jnp
from jax import lax
from jax.experimental import pallas as pl
from jax.experimental.pallas import tpu as pltpu

SMOOTH = 1e-5
LANE = 128
SUBLANE = 8
NCORES = 2                  # v7x megacore split; harmless (sequential) on v5e/v6e
DEFAULT_BLOCK_ROWS = 2048   # sweep 2048 / 4096 on v7x; ~4 MiB VMEM at 2048


def _make_dice_kernel(total_rows, block_rows, chunk, needs_mask):
    """Kernel over a (rows, 128) view; accumulates intersection and p+t sums."""
    n_chunks = block_rows // chunk
    assert n_chunks * chunk == block_rows

    def accumulate(p_ref, t_ref, oi_ref, opt_ref, valid_rows):
        # valid_rows: None on the unmasked fast path, else a traced scalar with
        # the number of valid rows in this block.  The mask is load-bearing:
        # stale VMEM rows of a partial block must not reach sum_p / sum_t.
        def body(ci, carry):
            acc_i, acc_pt = carry
            r0 = pl.multiple_of(ci * chunk, chunk)
            p = jax.nn.sigmoid(p_ref[pl.ds(r0, chunk), :].astype(jnp.float32))
            t = t_ref[pl.ds(r0, chunk), :].astype(jnp.float32)
            if valid_rows is not None:
                r_iota = lax.broadcasted_iota(jnp.int32, (chunk, LANE), 0)
                ok = (ci * chunk + r_iota) < valid_rows
                p = jnp.where(ok, p, 0.0)
                t = jnp.where(ok, t, 0.0)
            return acc_i + p * t, acc_pt + (p + t)

        zero = jnp.zeros((chunk, LANE), jnp.float32)
        acc_i, acc_pt = lax.fori_loop(0, n_chunks, body, (zero, zero))
        oi_ref[...] += acc_i            # one tiny VMEM RMW per grid step
        opt_ref[...] += acc_pt

    def kernel(p_ref, t_ref, oi_ref, opt_ref):
        c = pl.program_id(0)            # parallel (per-TensorCore) axis
        i = pl.program_id(1)            # sequential reduction axis

        @pl.when(i == 0)
        def _init():                    # per-core accumulator init
            oi_ref[...] = jnp.zeros_like(oi_ref)
            opt_ref[...] = jnp.zeros_like(opt_ref)

        if not needs_mask:
            accumulate(p_ref, t_ref, oi_ref, opt_ref, None)
        else:
            blk = c * pl.num_programs(1) + i        # unclamped block index
            valid = total_rows - blk * block_rows   # rows valid in this block

            @pl.when(valid >= block_rows)           # full block: fast path
            def _full():
                accumulate(p_ref, t_ref, oi_ref, opt_ref, None)

            @pl.when(jnp.logical_and(valid > 0, valid < block_rows))
            def _partial():                         # boundary block: row mask
                accumulate(p_ref, t_ref, oi_ref, opt_ref, valid)
            # valid <= 0 (phantom block on the short core): skip compute.

    return kernel


def _partial_sums(p, t):
    """Plain-jnp partial sums for tiny tails / tiny inputs."""
    p = jax.nn.sigmoid(p.astype(jnp.float32))
    t = t.astype(jnp.float32)
    return jnp.sum(p * t), jnp.sum(p) + jnp.sum(t)


def dice_loss(predictions, targets, *, smooth=SMOOTH,
              block_rows=DEFAULT_BLOCK_ROWS):
    """Pallas equivalent of DiceLoss.forward (returns a scalar f32).

    The kernel is HBM-bandwidth-bound; feeding bf16 predictions and bf16/int8
    binary targets halves/quarters wall time (they are upcast to f32 inside).
    """
    n = predictions.size
    p_flat = predictions.reshape(-1)
    t_flat = targets.reshape(-1)

    rows = n // LANE

    if rows < SUBLANE:                   # tiny input: kernel not worth launching
        inter, pt = _partial_sums(p_flat, t_flat)
        dice = (2.0 * inter + smooth) / (pt + smooth)
        return 1.0 - dice

    inter_tail = jnp.float32(0.0)
    pt_tail = jnp.float32(0.0)
    rem = n - rows * LANE
    if rem:
        # Ragged size: the <128-element lane tail is summed here; only the
        # 128-aligned prefix goes through the kernel (no full-array jnp.pad).
        # TODO(synk): a fully copy-free ragged path would need a 1-D manual-DMA
        # kernel; the prefix slice below may still cost one prefix copy.
        inter_tail, pt_tail = _partial_sums(p_flat[rows * LANE:],
                                            t_flat[rows * LANE:])
        p_flat = p_flat[: rows * LANE]
        t_flat = t_flat[: rows * LANE]

    p2d = p_flat.reshape(rows, LANE)
    t2d = t_flat.reshape(rows, LANE)

    # Block sizing: multiples of 32 rows (clean tiling for f32/bf16/int8 and a
    # 32-row inner chunk); small arrays fall back to a single <=24-row block.
    block_rows = max(32, (int(block_rows) // 32) * 32)
    if rows >= 32:
        block_rows_eff = min(block_rows, (rows // 32) * 32)
    else:
        block_rows_eff = (rows // SUBLANE) * SUBLANE        # 8 / 16 / 24
    chunk = 32 if block_rows_eff % 32 == 0 else block_rows_eff

    steps = pl.cdiv(rows, block_rows_eff)
    ncores = NCORES if steps >= NCORES else 1
    steps_inner = pl.cdiv(steps, ncores)
    # Masking needed iff the last block is partial or a phantom step exists.
    needs_mask = (steps * block_rows_eff != rows) or (ncores * steps_inner != steps)

    def in_map(c, i):
        # Clamp so phantom steps re-read the last real block (their compute is
        # skipped in-kernel); keeps every DMA in bounds.
        return (jnp.minimum(c * steps_inner + i, steps - 1), 0)

    kernel = _make_dice_kernel(rows, block_rows_eff, chunk, needs_mask)

    out_i, out_pt = pl.pallas_call(
        kernel,
        out_shape=(
            jax.ShapeDtypeStruct((ncores, chunk, LANE), jnp.float32),
            jax.ShapeDtypeStruct((ncores, chunk, LANE), jnp.float32),
        ),
        grid_spec=pltpu.PrefetchScalarGridSpec(
            num_scalar_prefetch=0,
            grid=(ncores, steps_inner),
            in_specs=[
                pl.BlockSpec((block_rows_eff, LANE), in_map),
                pl.BlockSpec((block_rows_eff, LANE), in_map),
            ],
            out_specs=[
                pl.BlockSpec((None, chunk, LANE), lambda c, i: (c, 0, 0)),
                pl.BlockSpec((None, chunk, LANE), lambda c, i: (c, 0, 0)),
            ],
        ),
        compiler_params=pltpu.CompilerParams(
            dimension_semantics=("parallel", "arbitrary"),
        ),
    )(p2d, t2d)

    inter = jnp.sum(out_i) + inter_tail
    pt = jnp.sum(out_pt) + pt_tail
    dice = (2.0 * inter + smooth) / (pt + smooth)
    return 1.0 - dice


def _dice_loss_ref(predictions, targets, smooth=SMOOTH):
    p = jax.nn.sigmoid(predictions.astype(jnp.float32)).reshape(-1)
    t = targets.astype(jnp.float32).reshape(-1)
    inter = jnp.sum(p * t)
    dice = (2.0 * inter + smooth) / (jnp.sum(p) + jnp.sum(t) + smooth)
    return 1.0 - dice


def _check(preds, tgts, **kw):
    loss = jax.block_until_ready(dice_loss(preds, tgts, **kw))
    ref = jax.block_until_ready(_dice_loss_ref(preds, tgts))
    assert jnp.allclose(loss, ref, atol=1e-4, rtol=1e-4), (loss, ref)


if __name__ == "__main__":
    key = jax.random.PRNGKey(0)
    k1, k2, k3, k4 = jax.random.split(key, 4)

    # Primary segmentation-style case: f32 logits + binary targets, NCHW.
    preds = jax.random.normal(k1, (2, 4, 16, 16), dtype=jnp.float32)
    tgts = (jax.random.uniform(k2, (2, 4, 16, 16)) > 0.5).astype(jnp.float32)
    _check(preds, tgts)

    # Ragged size (not a multiple of 128) + bf16 logits: wrapper lane-tail path,
    # partial-block row mask, and the two-core grid with a 1-row last block.
    preds_r = jax.random.normal(k3, (3, 5, 7, 11), dtype=jnp.bfloat16)
    tgts_r = (jax.random.uniform(k4, (3, 5, 7, 11)) > 0.5).astype(jnp.float32)
    _check(preds_r, tgts_r)

    # Partial final block with a small block_rows override.
    preds_m = jax.random.normal(k1, (2, 3, 64, 60), dtype=jnp.float32)
    tgts_m = (jax.random.uniform(k2, (2, 3, 64, 60)) > 0.5).astype(jnp.float32)
    _check(preds_m, tgts_m, block_rows=128)

    # Multi-step-per-core accumulation plus a phantom (skipped) block.
    preds_l = jax.random.normal(k3, (2, 4, 128, 130), dtype=jnp.float32)
    tgts_l = (jax.random.uniform(k4, (2, 4, 128, 130)) > 0.5).astype(jnp.float32)
    _check(preds_l, tgts_l, block_rows=256)

    print("KERNEL_OK")
</pallas_src>

<mosaic_0001>
module attributes {stable_mosaic.version = 11 : i64} {
  func.func @kernel(%arg0: i32, %arg1: i32, %arg2: memref<16x128xf32, #tpu.memory_space<vmem>>, %arg3: memref<16x128xf32, #tpu.memory_space<vmem>>, %arg4: memref<1x16x128xf32, #tpu.memory_space<vmem>>, %arg5: memref<1x16x128xf32, #tpu.memory_space<vmem>>) attributes {dimension_semantics = [#tpu.dimension_semantics<parallel>, #tpu.dimension_semantics<arbitrary>], iteration_bounds = array<i64: 1, 1>, scalar_prefetch = 0 : i64, scratch_operands = 0 : i64, tpu.core_type = #tpu.core_type<tc>, window_params = [{transform_indices = @transform_0, window_bounds = array<i64: 16, 128>}, {transform_indices = @transform_1, window_bounds = array<i64: 16, 128>}, {transform_indices = @transform_2, window_bounds = array<i64: 1, 16, 128>}, {transform_indices = @transform_3, window_bounds = array<i64: 1, 16, 128>}]} {
    %c0_i32 = arith.constant 0 : i32
    %0 = arith.cmpi eq, %arg1, %c0_i32 : i32
    %1 = arith.extui %0 : i1 to i32
    %c0_i32_0 = arith.constant 0 : i32
    %2 = arith.cmpi ne, %1, %c0_i32_0 : i32
    scf.if %2 {
      %cst_16 = arith.constant 0.000000e+00 : f32
      %31 = vector.broadcast %cst_16 : f32 to vector<16x128xf32>
      %c0_17 = arith.constant 0 : index
      %c0_18 = arith.constant 0 : index
      %c0_19 = arith.constant 0 : index
      %32 = vector.load %arg4[%c0_17, %c0_18, %c0_19] : memref<1x16x128xf32, #tpu.memory_space<vmem>>, vector<1x16x128xf32>
      %33 = vector.shape_cast %32 : vector<1x16x128xf32> to vector<16x128xf32>
      %34 = vector.shape_cast %31 : vector<16x128xf32> to vector<1x16x128xf32>
      tpu.vector_store %arg4[%c0_17, %c0_18, %c0_19], %34 {strides = array<i32>} : memref<1x16x128xf32, #tpu.memory_space<vmem>>, vector<1x16x128xf32>,
      %cst_20 = arith.constant 0.000000e+00 : f32
      %35 = vector.broadcast %cst_20 : f32 to vector<16x128xf32>
      %c0_21 = arith.constant 0 : index
      %c0_22 = arith.constant 0 : index
      %c0_23 = arith.constant 0 : index
      %36 = vector.load %arg5[%c0_21, %c0_22, %c0_23] : memref<1x16x128xf32, #tpu.memory_space<vmem>>, vector<1x16x128xf32>
      %37 = vector.shape_cast %36 : vector<1x16x128xf32> to vector<16x128xf32>
      %38 = vector.shape_cast %35 : vector<16x128xf32> to vector<1x16x128xf32>
      tpu.vector_store %arg5[%c0_21, %c0_22, %c0_23], %38 {strides = array<i32>} : memref<1x16x128xf32, #tpu.memory_space<vmem>>, vector<1x16x128xf32>,
    } else {
    }
    %cst = arith.constant 0.000000e+00 : f32
    %3 = vector.broadcast %cst : f32 to vector<16x128xf32>
    %c0_i32_1 = arith.constant 0 : i32
    %c16_i32 = arith.constant 16 : i32
    %4 = arith.muli %c0_i32_1, %c16_i32 : i32
    %5 = tpu.assume_multiple %4, 16 : i32
    %6 = arith.index_cast %5 : i32 to index
    %c0 = arith.constant 0 : index
    %7 = vector.load %arg2[%6, %c0] : memref<16x128xf32, #tpu.memory_space<vmem>>, vector<16x128xf32>
    %8 = arith.negf %7 : vector<16x128xf32>
    %9 = math.exp %8 : vector<16x128xf32>
    %cst_2 = arith.constant 1.000000e+00 : f32
    %10 = vector.broadcast %cst_2 : f32 to vector<16x128xf32>
    %11 = arith.addf %10, %9 : vector<16x128xf32>
    %12 = arith.divf %10, %11 : vector<16x128xf32>
    %13 = arith.index_cast %5 : i32 to index
    %c0_3 = arith.constant 0 : index
    %14 = vector.load %arg3[%13, %c0_3] : memref<16x128xf32, #tpu.memory_space<vmem>>, vector<16x128xf32>
    %15 = arith.mulf %12, %14 : vector<16x128xf32>
    %16 = arith.addf %3, %15 : vector<16x128xf32>
    %17 = arith.addf %12, %14 : vector<16x128xf32>
    %18 = arith.addf %3, %17 : vector<16x128xf32>
    %c1_i32 = arith.constant 1 : i32
    %c0_4 = arith.constant 0 : index
    %c0_5 = arith.constant 0 : index
    %c0_6 = arith.constant 0 : index
    %19 = vector.load %arg4[%c0_4, %c0_5, %c0_6] : memref<1x16x128xf32, #tpu.memory_space<vmem>>, vector<1x16x128xf32>
    %20 = vector.shape_cast %19 : vector<1x16x128xf32> to vector<16x128xf32>
    %21 = arith.addf %20, %16 : vector<16x128xf32>
    %c0_7 = arith.constant 0 : index
    %c0_8 = arith.constant 0 : index
    %c0_9 = arith.constant 0 : index
    %22 = vector.load %arg4[%c0_7, %c0_8, %c0_9] : memref<1x16x128xf32, #tpu.memory_space<vmem>>, vector<1x16x128xf32>
    %23 = vector.shape_cast %22 : vector<1x16x128xf32> to vector<16x128xf32>
    %24 = vector.shape_cast %21 : vector<16x128xf32> to vector<1x16x128xf32>
    tpu.vector_store %arg4[%c0_7, %c0_8, %c0_9], %24 {strides = array<i32>} : memref<1x16x128xf32, #tpu.memory_space<vmem>>, vector<1x16x128xf32>,
    %c0_10 = arith.constant 0 : index
    %c0_11 = arith.constant 0 : index
    %c0_12 = arith.constant 0 : index
    %25 = vector.load %arg5[%c0_10, %c0_11, %c0_12] : memref<1x16x128xf32, #tpu.memory_space<vmem>>, vector<1x16x128xf32>
    %26 = vector.shape_cast %25 : vector<1x16x128xf32> to vector<16x128xf32>
    %27 = arith.addf %26, %18 : vector<16x128xf32>
    %c0_13 = arith.constant 0 : index
    %c0_14 = arith.constant 0 : index
    %c0_15 = arith.constant 0 : index
    %28 = vector.load %arg5[%c0_13, %c0_14, %c0_15] : memref<1x16x128xf32, #tpu.memory_space<vmem>>, vector<1x16x128xf32>
    %29 = vector.shape_cast %28 : vector<1x16x128xf32> to vector<16x128xf32>
    %30 = vector.shape_cast %27 : vector<16x128xf32> to vector<1x16x128xf32>
    tpu.vector_store %arg5[%c0_13, %c0_14, %c0_15], %30 {strides = array<i32>} : memref<1x16x128xf32, #tpu.memory_space<vmem>>, vector<1x16x128xf32>,
    return
  }
  func.func @transform_0(%arg0: i32, %arg1: i32) -> (i32, i32) {
    %c1_i32 = arith.constant 1 : i32
    %0 = arith.muli %arg0, %c1_i32 : i32
    %1 = arith.addi %0, %arg1 : i32
    %c0_i32 = arith.constant 0 : i32
    %2 = arith.minsi %1, %c0_i32 : i32
    %c0_i32_0 = arith.constant 0 : i32
    %c0_i32_1 = arith.constant 0 : i32
    return %2, %c0_i32_0 : i32, i32
  }
  func.func @transform_1(%arg0: i32, %arg1: i32) -> (i32, i32) {
    %c1_i32 = arith.constant 1 : i32
    %0 = arith.muli %arg0, %c1_i32 : i32
    %1 = arith.addi %0, %arg1 : i32
    %c0_i32 = arith.constant 0 : i32
    %2 = arith.minsi %1, %c0_i32 : i32
    %c0_i32_0 = arith.constant 0 : i32
    %c0_i32_1 = arith.constant 0 : i32
    return %2, %c0_i32_0 : i32, i32
  }
  func.func @transform_2(%arg0: i32, %arg1: i32) -> (i32, i32, i32) {
    %c0_i32 = arith.constant 0 : i32
    %c0_i32_0 = arith.constant 0 : i32
    %c0_i32_1 = arith.constant 0 : i32
    return %arg0, %c0_i32, %c0_i32_0 : i32, i32, i32
  }
  func.func @transform_3(%arg0: i32, %arg1: i32) -> (i32, i32, i32) {
    %c0_i32 = arith.constant 0 : i32
    %c0_i32_0 = arith.constant 0 : i32
    %c0_i32_1 = arith.constant 0 : i32
    return %arg0, %c0_i32, %c0_i32_0 : i32, i32, i32
  }
}

</mosaic_0001>

<bundles_post_ra>
// kernel: tpu_custom_call.1
= control target key start
LH: loop header
LB: loop body
LE: loop exit
PB: predicated region body
PF: predicated region fallthrough
CT: control target
= control target key end

     0   :  { %9 = vsyncpa [#allocation3], 0  ;;  %s350_s0 = inlined_call_operand.hbm [shape: f32[16,128], index: 0, kind: input, shape index: {}]   ;;  %s351_s1 = inlined_call_operand.hbm [shape: f32[16,128], index: 1, kind: input, shape index: {}]   ;;  %s352_s2 = inlined_call_operand.hbm [shape: f32[1,16,128], index: 2, kind: output, shape index: {0}]   ;;  %s353_s3 = inlined_call_operand.hbm [shape: f32[1,16,128], index: 3, kind: output, shape index: {1}]  }
   0x1   :  { %10 = vsyncpa [#allocation6], 0 }
   0x2   :  { %11 = vsyncpa [#allocation4], 0 }
   0x3   :  { %12 = vsyncpa [#allocation9], 0  ;;  %s23_s14 = sshll.u32 %s350_s0, 4  ;;  %s300_s15 = smov [#allocation2]   ;;  %s24_s14 = int_to_ptr.hbm [resolvable:$true] %s23_s14 }
   0x4   :  { %s25_s16 = sshll.u32 %s300_s15, 4  ;;  %s42_s19 = sshll.u32 %s351_s1, 4  ;;  %s26_s16 = int_to_ptr.vmem [resolvable:$true] %s25_s16  ;;  %s43_s19 = int_to_ptr.hbm [resolvable:$true] %s42_s19 }
   0x5   :  { %s301_s20 = smov 128   ;;  %s302_s21 = smov 8  }
   0x6   :  { %31 = dma.hbm_to_vmem [thread:$0]  %s24_s14, 256, %s26_s16, [#allocation3], %s301_s20, %s301_s20, %s302_s21  }
   0x7   :  { %s303_s22 = smov [#allocation5]  }
   0x8   :  { %s44_s23 = sshll.u32 %s303_s22, 4  ;;  %s45_s23 = int_to_ptr.vmem [resolvable:$true] %s44_s23 }
   0x9   :  { %50 = dma.hbm_to_vmem [thread:$0]  %s43_s19, 256, %s45_s23, [#allocation6], %s301_s20, %s301_s20, %s302_s21  }
   0xa   :  { %292 = dma.done.wait [#allocation3], 256  }
   0xb   :  { %293 = vsyncadd [#allocation3], 4294967040 }
   0xc   :  { %294 = dma.done.wait [#allocation6], 256  }
   0xd   :  { %295 = vsyncadd [#allocation6], 4294967040  ;;  %v75_v0 = vld [vmem:[#allocation2] sm:$0xff]  ;;  %v76_v1 = vld [vmem:[#allocation2 + $0x8] sm:$0xff]  ;;  %s304_s0 = smov [#allocation7]   ;;  %s143_s26 = sshll.u32 %s352_s2, 4  ;;  %s144_s26 = int_to_ptr.hbm [resolvable:$true] %s143_s26 }
   0xe   :  { %v179_v2 = vmul.f32 -1.442695, %v75_v0  ;;  %v180_v3 = vmul.f32 -1.442695, %v76_v1  ;;  %v115_v23 = vld [vmem:[#allocation5] sm:$0xff]  ;;  %v116_v26 = vld [vmem:[#allocation5 + $0x8] sm:$0xff] }
   0xf   :  { %s141_s1 = sshll.u32 %s304_s0, 4  ;;  %s305_s27 = smov [#allocation8]   ;;  %s142_s1 = int_to_ptr.vmem [resolvable:$true] %s141_s1 }
  0x10   :  { %188 = vpow2.f32 %v179_v2  ;;  %s154_s28 = sshll.u32 %s305_s27, 4  ;;  %s156_s4 = sshll.u32 %s353_s3, 4  ;;  %s155_s28 = int_to_ptr.vmem [resolvable:$true] %s154_s28  ;;  %s157_s4 = int_to_ptr.hbm [resolvable:$true] %s156_s4 }
  0x11   :  { %190 = vpow2.f32 %v180_v3 }
  0x16   :  { %v189_v4 = vpop.eup %188 }
  0x17   :  { %v191_v5 = vpop.eup %190  ;;  %v83_v6 = vadd.f32 1.0, %v189_v4 }
  0x18   :  { %v84_v7 = vadd.f32 1.0, %v191_v5 }
  0x19   :  { %192 = vrcp.f32 %v83_v6  ;;  %vm90_vm0 = vweird.f32 %v83_v6  ;;  %v96_v11 = vand.u32 2147483648, %v83_v6  ;;  %v94_v14 = vand.u32 2147483647, %v83_v6 }
  0x1a   :  { %194 = vrcp.f32 %v84_v7  ;;  %v111_v15 = vand.u32 2147483648, %v84_v7  ;;  %vm105_vm2 = vweird.f32 %v84_v7  ;;  %v109_v17 = vand.u32 2147483647, %v84_v7 }
  0x1b   :  { %v97_v19 = vor.u32 1.1754944e-38, %v96_v11  ;;  %vm95_vm5 = vcmp.eq.f32.partialorder %v94_v14, 8.507059e+37 }
  0x1c   :  { %v112_v22 = vor.u32 1.1754944e-38, %v111_v15  ;;  %vm110_vm7 = vcmp.eq.f32.partialorder %v109_v17, 8.507059e+37 }
  0x1f   :  { %v193_v8 = vpop.eup %192 }
  0x20   :  { %v195_v9 = vpop.eup %194  ;;  %v86_v10 = vmul.f32 %v193_v8, %v83_v6  ;;  %vm91_vm1 = vweird.f32 %v193_v8 }
  0x21   :  { %v101_v12 = vmul.f32 %v195_v9, %v84_v7  ;;  %vm106_vm3 = vweird.f32 %v195_v9  ;;  %vm92_vm4 = vmor %vm90_vm0, %vm91_vm1 }
  0x22   :  { %v87_v13 = vsub.f32 1.0, %v86_v10  ;;  %vm107_vm6 = vmor %vm105_vm2, %vm106_vm3 }
  0x23   :  { %v102_v16 = vsub.f32 1.0, %v101_v12 }
  0x24   :  { %v88_v18 = vmul.f32 %v193_v8, %v87_v13 }
  0x25   :  { %v103_v20 = vmul.f32 %v195_v9, %v102_v16 }
  0x26   :  { %v89_v21 = vadd.f32 %v193_v8, %v88_v18 }
  0x27   :  { %v104_v24 = vadd.f32 %v195_v9, %v103_v20 }
  0x28   :  { %v93_v25 = vsel %vm92_vm4, %v193_v8, %v89_v21 }
  0x29   :  { %v98_v27 = vsel %vm95_vm5, %v97_v19, %v93_v25  ;;  %v108_v28 = vsel %vm107_vm6, %v195_v9, %v104_v24 }
  0x2a   :  { %v117_v29 = vmul.f32 %v115_v23, %v98_v27  ;;  %v113_v30 = vsel %vm110_vm7, %v112_v22, %v108_v28  ;;  %v121_v31 = vadd.f32 %v115_v23, %v98_v27 }
  0x2b   :  { %v118_v32 = vmul.f32 %v116_v26, %v113_v30  ;;  %v122_v33 = vadd.f32 %v116_v26, %v113_v30 }
  0x2c   :  { %129 = vst [vmem:[#allocation7] sm:$0xff] %v117_v29 }
  0x2d   :  { %130 = vst [vmem:[#allocation7 + $0x8] sm:$0xff] %v118_v32 }
  0x2e   :  { %135 = vst [vmem:[#allocation8] sm:$0xff] %v121_v31  ;;  %149 = dma.vmem_to_hbm [thread:$0]  %s142_s1, 256, %s144_s26, [#allocation4], %s301_s20, %s301_s20, %s302_s21  }
  0x2f   :  { %136 = vst [vmem:[#allocation8 + $0x8] sm:$0xff] %v122_v33 }
  0x30   :  { %162 = dma.vmem_to_hbm [thread:$0]  %s155_s28, 256, %s157_s4, [#allocation9], %s301_s20, %s301_s20, %s302_s21  }
  0x31   :  { %296 = dma.done.wait [#allocation4], 256  }
  0x32   :  { %297 = vsyncadd [#allocation4], 4294967040 }
  0x33   :  { %298 = dma.done.wait [#allocation9], 256  }
  0x34   :  { %299 = vsyncadd [#allocation9], 4294967040 }
  0x35   :  { %171 = vsyncpa [#allocation3], 1 }
  0x36   :  { %172 = vsyncpa [#allocation6], 1 }
  0x37   :  { %173 = vsyncpa [#allocation4], 1 }
  0x38   :  { %174 = vsyncpa [#allocation9], 1 }

</bundles_post_ra>
